<compile_context>
chip_gen: v5e
topology: v5e:2x2
jax: 0.10.0
libtpu: 0.0.40
codegen_flags: <defaults>
</compile_context>

<pallas_src>
import math

import numpy as np
import jax
import jax.numpy as jnp
from jax.experimental import pallas as pl
from jax.experimental.pallas import tpu as pltpu

_LANE = 128
_MAX_BLOCK_BYTES = 4 * 1024 * 1024  # per output block (Pallas double-buffers it)


def _anchor_table(h, w, row, col, grid_scale):
    """Trace-time (shape-only) anchor table; identical math to the PyTorch module."""
    gx, gy = float(grid_scale[0]), float(grid_scale[1])
    x_space = gx / row
    y_space = gy / col
    deltas = np.array(
        [[-x_space, -y_space], [x_space, -y_space], [0.0, 0.0],
         [-x_space, y_space], [x_space, y_space]], dtype=np.float64) / 2.0
    centers = np.stack(
        np.meshgrid(np.arange(math.ceil(w / gx)) + 0.5,
                    np.arange(math.ceil(h / gy)) + 0.5), -1
    ) * np.array(grid_scale, dtype=np.float64)
    anchors = np.expand_dims(centers, 2) + deltas              # (nh, nw, 5, 2)
    return anchors.reshape(-1, 2).astype(np.float32)           # (N, 2), (x, y)


def _choose_batch_block(bs, bytes_per_batch_row):
    """Largest divisor of bs that fits the VMEM budget and, for bs >= 2, keeps
    at least two grid steps so both v7x TensorCores get work."""
    cap = max(1, _MAX_BLOCK_BYTES // max(bytes_per_batch_row, 1))
    if bs >= 2:
        cap = min(cap, bs - 1)          # force >= 2 grid steps
    best = 1
    for d in range(1, bs + 1):
        if bs % d == 0 and d <= cap:
            best = d
    return best


def _repeat_kernel(table_ref, o_ref):
    # Table block index is constant across the grid -> loaded into VMEM once.
    # One fat, lane-dense store per step: (bs_blk, rows, 128) of replicated rows.
    o_ref[...] = jnp.broadcast_to(table_ref[...][None], o_ref.shape)


def anchor_points(images, row=2, col=2, grid_scale=(32, 32)):
    """Pallas equivalent of AnchorPoints.forward(images) for NCHW `images`."""
    bs, _, h, w = images.shape

    table = _anchor_table(h, w, row, col, grid_scale)          # (N, 2) float32
    n = table.shape[0]
    flat_len = n * 2

    # Lane-dense packing: (rows, 128) slab, padded only on the trailing lanes.
    rows = pl.cdiv(flat_len, _LANE)
    padded_len = rows * _LANE
    flat = np.zeros((padded_len,), dtype=np.float32)
    flat[:flat_len] = table.reshape(-1)
    slab = jnp.asarray(flat.reshape(rows, _LANE))

    bytes_per_batch_row = padded_len * 4
    bs_blk = _choose_batch_block(bs, bytes_per_batch_row)
    grid = (bs // bs_blk,)

    out = pl.pallas_call(
        _repeat_kernel,
        out_shape=jax.ShapeDtypeStruct((bs, rows, _LANE), jnp.float32),
        grid=grid,
        in_specs=[pl.BlockSpec((rows, _LANE), lambda b: (0, 0))],
        out_specs=pl.BlockSpec((bs_blk, rows, _LANE), lambda b: (b, 0, 0)),
        compiler_params=pltpu.CompilerParams(
            dimension_semantics=("parallel",),
            vmem_limit_bytes=32 * 1024 * 1024),
    )(slab)

    # Layout plumbing: drop lane padding (free bitcast when flat_len % 128 == 0)
    # and expose the module's (bs, N, 2), (x, y)-ordered view.
    return out.reshape(bs, padded_len)[:, :flat_len].reshape(bs, n, 2)


def _reference_numpy(images_shape, row=2, col=2, grid_scale=(32, 32)):
    """Direct port of the PyTorch forward for verification."""
    bs, _, h, w = images_shape
    gx, gy = grid_scale
    x_space = gx / row
    y_space = gy / col
    deltas = np.array(
        [[-x_space, -y_space], [x_space, -y_space], [0, 0],
         [-x_space, y_space], [x_space, y_space]]
    ) / 2
    centers = np.stack(
        np.meshgrid(np.arange(np.ceil(w / gx)) + 0.5,
                    np.arange(np.ceil(h / gy)) + 0.5), -1
    ) * np.array(grid_scale)
    anchors = np.expand_dims(centers, 2) + deltas              # (nh, nw, 5, 2)
    anchors = anchors.reshape(-1, 2).astype(np.float32)        # flatten(0, 2)
    return np.broadcast_to(anchors[None], (bs,) + anchors.shape).copy()


if __name__ == "__main__":
    key = jax.random.PRNGKey(0)
    test_shapes = [
        (2, 3, 64, 64),    # N=20,  flat_len=40  -> lane-padding / slice path
        (3, 3, 96, 80),    # non-multiple-of-grid w, odd batch, N=45
        (2, 3, 256, 256),  # N=320, flat_len=640 -> no padding (free reshape)
    ]
    for shape in test_shapes:
        images = jax.random.normal(key, shape, dtype=jnp.float32)
        out = jax.block_until_ready(anchor_points(images))
        ref = _reference_numpy(shape)
        assert out.shape == ref.shape, (out.shape, ref.shape)
        np.testing.assert_allclose(np.asarray(out), ref, rtol=0, atol=1e-5)

    print("KERNEL_OK")
</pallas_src>

<mosaic_0001>
module attributes {stable_mosaic.version = 11 : i64} {
  func.func @_repeat_kernel(%arg0: i32, %arg1: memref<1x128xf32, #tpu.memory_space<vmem>>, %arg2: memref<1x1x128xf32, #tpu.memory_space<vmem>>) attributes {dimension_semantics = [#tpu.dimension_semantics<parallel>], iteration_bounds = array<i64: 2>, scalar_prefetch = 0 : i64, scratch_operands = 0 : i64, tpu.core_type = #tpu.core_type<tc>, window_params = [{pipeline_mode = #tpu.pipeline_mode<synchronous>, transform_indices = @transform_0, window_bounds = array<i64: 1, 128>}, {transform_indices = @transform_1, window_bounds = array<i64: 1, 1, 128>}]} {
    %c0 = arith.constant 0 : index
    %c0_0 = arith.constant 0 : index
    %0 = vector.load %arg1[%c0, %c0_0] : memref<1x128xf32, #tpu.memory_space<vmem>>, vector<1x128xf32>
    %1 = vector.shape_cast %0 : vector<1x128xf32> to vector<1x1x128xf32>
    %c0_1 = arith.constant 0 : index
    %c0_2 = arith.constant 0 : index
    %c0_3 = arith.constant 0 : index
    %2 = vector.load %arg2[%c0_1, %c0_2, %c0_3] : memref<1x1x128xf32, #tpu.memory_space<vmem>>, vector<1x1x128xf32>
    tpu.vector_store %arg2[%c0_1, %c0_2, %c0_3], %1 {strides = array<i32>} : memref<1x1x128xf32, #tpu.memory_space<vmem>>, vector<1x1x128xf32>,
    return
  }
  func.func @transform_0(%arg0: i32) -> (i32, i32) {
    %c0_i32 = arith.constant 0 : i32
    %c0_i32_0 = arith.constant 0 : i32
    %c0_i32_1 = arith.constant 0 : i32
    return %c0_i32, %c0_i32_0 : i32, i32
  }
  func.func @transform_1(%arg0: i32) -> (i32, i32, i32) {
    %c0_i32 = arith.constant 0 : i32
    %c0_i32_0 = arith.constant 0 : i32
    %c0_i32_1 = arith.constant 0 : i32
    return %arg0, %c0_i32, %c0_i32_0 : i32, i32, i32
  }
}

</mosaic_0001>

<bundles_post_ra>
// kernel: tpu_custom_call.1
= control target key start
LH: loop header
LB: loop body
LE: loop exit
PB: predicated region body
PF: predicated region fallthrough
CT: control target
= control target key end

     0   :  { %6 = vsyncpa [#allocation3], 0  ;;  %s429_s0 = inlined_call_operand.hbm [shape: f32[1,128], index: 0, kind: input, shape index: {}]   ;;  %s430_s1 = inlined_call_operand.hbm [shape: f32[2,1,128], index: 1, kind: output, shape index: {}]  }
   0x1   :  { %7 = vsyncpa [#allocation4], 0 }
   0x2   :  { %9 = vsyncpa [#allocation4 + $0x1], 0  ;;  %s345_s6 = smov 0   ;;  %s347_s7 = smov 0  }
   0x3   :  { %s349_s8 = smov 0   ;;  %s351_s9 = smov 0  }
   0x4 LB: > { %s366_s10 = sadd.s32 4294967295, %s332_s9   ;;  %s179_s11 = sadd.s32 4294967294, %s332_s9   ;;  %s332_s9 = sphi %s351_s9, %s436_s9   ;;  %s328_s8 = sphi %s349_s8, %s435_s8   ;;  %s324_s7 = sphi %s347_s7, %s434_s7   ;;  %s320_s6 = sphi %s345_s6, %s433_s6  }
   0x5   : > { %s370_s12 = sadd.s32 1, %s332_s9   ;;  %s43_s13 = sadd.s32 1, %s328_s8 }
   0x6   : > { %s40_s14 = ssub.s32 %s332_s9, %s370_s12  ;;  %p53_p0 = scmp.ne.s32.totalorder %s328_s8, %s324_s7 }
   0x7   : > { %p41_p1 = scmp.eq.s32.totalorder %s40_s14, 0  ;;  %p54_p2 = scmp.eq.s32.totalorder %s366_s10, 1 }
   0x8   : > { %p59_p3 = scmp.ne.s32.totalorder %s324_s7, %s320_s6  ;;  %p60_p4 = scmp.eq.s32.totalorder %s179_s11, 1 }
   0x9   : > { %s381_s15 = scalar_select %p41_p1, %s328_s8, %s43_s13  }
   0xa   : > { %p383_p5 = por %p54_p2, %p53_p0  ;;  %p387_p6 = por %p60_p4, %p59_p3 }
   0xb   : > { %p180_p7 = scmp.ge.s32.totalorder %s332_s9, 1  ;;  %p67_p8 = scmp.lt.s32.totalorder %s332_s9, 3 }
   0xc   : > { %p200_p9 = scmp.eq.s32.totalorder %s366_s10, 0  ;;  %s79_s20 = sshll.u32 %s429_s0, 4  ;;  %s80_s20 = int_to_ptr.hbm [resolvable:$true] %s79_s20 }
   0xd   : > { %p68_p10 = pnand %p180_p7, %p67_p8  ;;  %s334_s21 = smov [#allocation2]  }
   0xe   : > { %s81_s22 = sshll.u32 %s334_s21, 4  ;;  %s82_s22 = int_to_ptr.vmem [resolvable:$true] %s81_s22 }
   0xf   : > { %p192_p11 = pneg %p68_p10  ;;  %94 = sbr.rel (%p68_p10) target bundleno = 36 (0x24), region = 24 }
  0x11   : > { %p193_p12 = pnand %p200_p9, %p192_p11 }
  0x13   : > { %195 = dma.hbm_to_vmem [thread:$0]  (!%p193_p12), %s80_s20, 16, %s82_s22, [#allocation3]  }
  0x14   : > { %311 = dma.done.wait (%p200_p9), [#allocation3], 16  }
  0x15   : > { %313 = vsyncadd (%p200_p9), [#allocation3], 4294967280  ;;  %s107_s23 = sand.u32 1, %s324_s7   ;;  %s120_s26 = scalar_lea.hbm %s430_s1, %s366_s10  ;;  %v109_v0 = vld [vmem:[#allocation2] sm:$0x1] }
  0x16   : > { %s108_s27 = scalar_lea.vmem [#allocation5], %s107_s23  ;;  %s124_s29 = sshll.u32 %s120_s26, 4  ;;  %s125_s29 = int_to_ptr.hbm [resolvable:$true] %s124_s29 }
  0x17   : > { %s122_s28 = sshll.u32 %s108_s27, 4  ;;  %110 = vst [vmem:[%s108_s27] sm:$0x1] %v109_v0  ;;  %s112_s30 = scalar_lea.sflag [#allocation4], %s107_s23  ;;  %s123_s28 = int_to_ptr.vmem [resolvable:$true] %s122_s28 }
  0x18   : > { %s280_s2 = sshra.s32 %s125_s29, 4  ;;  %s286_s11 = scalar_lea.hbm %s430_s1, 2  ;;  %s281_s2 = int_to_ptr.hbm [resolvable:$true] %s280_s2 }
  0x19   : > { %s282_s3 = scalar_lea.hbm %s281_s2, 1  ;;  %p287_p2 = scmp.lt.s32.totalorder %s281_s2, %s430_s1 }
  0x1a   : > { %p283_p13 = scmp.ne.s32.totalorder %s281_s2, %s282_s3  ;;  %p288_p3 = scmp.lt.s32.totalorder %s286_s11, %s282_s3 }
  0x1c   : > { %p284_p0 = pnand %p283_p13, %p383_p5  ;;  %p289_p4 = por %p288_p3, %p287_p2 }
  0x1e   : > { %p285_p1 = pneg %p284_p0 }
  0x20   : > { %p290_p7 = pnand %p289_p4, %p285_p1 }
  0x22   : > { %293 = shalt.err (!%p290_p7)
}
  0x23   : > { %190 = dma.vmem_to_hbm [thread:$0]  (%p383_p5), %s123_s28, 16, %s125_s29, %s112_s30  }
  0x24 PF: > { %p202_p8 = scmp.ge.s32.totalorder %s332_s9, 2  ;;  %s136_s14 = sand.u32 1, %s320_s6  }
  0x25   : > { %s137_s18 = scalar_lea.sflag [#allocation4], %s136_s14 }
  0x26   : > { %p197_p9 = pnand %p202_p8, %p387_p6 }
  0x28   : > { %p198_p10 = pneg %p197_p9 }
  0x2a   : > { %315 = dma.done.wait (%p198_p10), %s137_s18, 16  }
  0x2b   : > { %317 = vsyncadd (%p198_p10), %s137_s18, 4294967280  ;;  %p12_p11 = scmp.ge.s32.totalorder %s370_s12, 4   ;;  %s433_s6 = smov %s324_s7 }
  0x2c   : > { %s434_s7 = smov %s328_s8  ;;  %s435_s8 = smov %s381_s15 }
  0x2d   : > { %s436_s9 = smov %s370_s12  ;;  %14 = sbr.rel (!%p12_p11) target bundleno = 4 (0x4), region = 61 }
  0x32   :  { %142 = vsyncpa [#allocation3], 1 }
  0x33   :  { %144 = vsyncpa [#allocation3 + $0x1], 1 }
  0x34   :  { %145 = vsyncpa [#allocation4], 1 }
  0x35   :  { %147 = vsyncpa [#allocation4 + $0x1], 1 }

</bundles_post_ra>
